<compile_context>
chip_gen: v6e
topology: v6e:2x2x1
jax: 0.10.0
libtpu: 0.0.40
codegen_flags: <defaults>
</compile_context>

<pallas_src>
import jax
import jax.numpy as jnp
from jax import lax
from jax.experimental import pallas as pl
from jax.experimental.pallas import tpu as pltpu


def linear_kernel(x_ref, wt_ref, b_ref, o_ref):
    # x_ref:  (B, IN)   VMEM
    # wt_ref: (IN, OUT) VMEM  (weight already transposed in the wrapper)
    # b_ref:  (1, OUT)  VMEM
    # o_ref:  (B, OUT)  VMEM
    x = x_ref[...]
    wt = wt_ref[...]

    # y = x @ W^T, in MXU-native (M, K) x (K, N) form — no relayout needed.
    y = lax.dot_general(
        x, wt,
        dimension_numbers=(((1,), (0,)), ((), ())),
        preferred_element_type=jnp.float32,
    )

    # Single broadcast add: (B, OUT) + (1, OUT).
    o_ref[...] = (y + b_ref[...]).astype(o_ref.dtype)


def simple_model_forward(x, weight, bias):
    """Forward pass of SimpleModel: y = x @ weight.T + bias."""
    B, in_features = x.shape
    out_features, in_features_w = weight.shape
    assert in_features == in_features_w

    # Pre-transpose the weight outside the kernel so the in-kernel contraction
    # is the standard MXU-native form on v5e/v6e/v7x alike.
    wt = weight.T                       # (IN, OUT)
    bias2d = bias.reshape(1, out_features)

    return pl.pallas_call(
        linear_kernel,
        out_shape=jax.ShapeDtypeStruct((B, out_features), x.dtype),
        in_specs=[
            pl.BlockSpec(memory_space=pltpu.MemorySpace.VMEM),   # x
            pl.BlockSpec(memory_space=pltpu.MemorySpace.VMEM),   # weight^T
            pl.BlockSpec(memory_space=pltpu.MemorySpace.VMEM),   # bias
        ],
        out_specs=pl.BlockSpec(memory_space=pltpu.MemorySpace.VMEM),
    )(x, wt, bias2d)


if __name__ == "__main__":
    key = jax.random.PRNGKey(0)
    k_x, k_w, k_b = jax.random.split(key, 3)

    B, IN, OUT = 8, 5, 3

    # Deterministic synthetic parameters (PyTorch-style uniform init bounds).
    bound = 1.0 / (IN ** 0.5)
    weight = jax.random.uniform(k_w, (OUT, IN), jnp.float32, -bound, bound)
    bias = jax.random.uniform(k_b, (OUT,), jnp.float32, -bound, bound)

    x = jax.random.normal(k_x, (B, IN), jnp.float32)

    out = simple_model_forward(x, weight, bias)
    out = jax.block_until_ready(out)

    # Reference check against plain JAX.
    ref = x @ weight.T + bias
    assert out.shape == (B, OUT)
    assert jnp.allclose(out, ref, atol=1e-5, rtol=1e-5)

    print("KERNEL_OK")
</pallas_src>

<mosaic_0001>
module attributes {stable_mosaic.version = 11 : i64} {
  func.func @linear_kernel(%arg0: memref<8x5xf32, #tpu.memory_space<vmem>>, %arg1: memref<5x3xf32, #tpu.memory_space<vmem>>, %arg2: memref<1x3xf32, #tpu.memory_space<vmem>>, %arg3: memref<8x3xf32, #tpu.memory_space<vmem>>) attributes {dimension_semantics = [], scalar_prefetch = 0 : i64, scratch_operands = 0 : i64, tpu.core_type = #tpu.core_type<tc>} {
    %c0 = arith.constant 0 : index
    %c0_0 = arith.constant 0 : index
    %0 = vector.load %arg0[%c0, %c0_0] : memref<8x5xf32, #tpu.memory_space<vmem>>, vector<8x5xf32>
    %c0_1 = arith.constant 0 : index
    %c0_2 = arith.constant 0 : index
    %1 = vector.load %arg1[%c0_1, %c0_2] : memref<5x3xf32, #tpu.memory_space<vmem>>, vector<5x3xf32>
    %cst = arith.constant dense<0.000000e+00> : vector<8x3xf32>
    %2 = tpu.matmul %0, %1, %cst {dimension_numbers = #tpu.dot_dimension_numbers<[1], [0], [0], [1], [0, 0, 1, 1], [], []>} : vector<8x5xf32>, vector<5x3xf32>, vector<8x3xf32> -> vector<8x3xf32>
    %c0_3 = arith.constant 0 : index
    %c0_4 = arith.constant 0 : index
    %3 = vector.load %arg2[%c0_3, %c0_4] : memref<1x3xf32, #tpu.memory_space<vmem>>, vector<1x3xf32>
    %4 = vector.broadcast %3 : vector<1x3xf32> to vector<8x3xf32>
    %5 = arith.addf %2, %4 : vector<8x3xf32>
    %c0_5 = arith.constant 0 : index
    %c0_6 = arith.constant 0 : index
    %6 = vector.load %arg3[%c0_5, %c0_6] : memref<8x3xf32, #tpu.memory_space<vmem>>, vector<8x3xf32>
    tpu.vector_store %arg3[%c0_5, %c0_6], %5 {strides = array<i32>} : memref<8x3xf32, #tpu.memory_space<vmem>>, vector<8x3xf32>,
    return
  }
}

</mosaic_0001>

<bundles_post_ra>
// kernel: tpu_custom_call.1
= control target key start
LH: loop header
LB: loop body
LE: loop exit
PB: predicated region body
PF: predicated region fallthrough
CT: control target
= control target key end

     0   :  { %vm27_vm0 = vcmask 1044480   ;;  %vm23_vm1 = vcmask 39936   ;;  %v119_v0 = vmov 0.0   ;;  %vm120_vm2 = vmmov 0   ;;  %s153_s1 = inlined_call_operand.vmem [shape: f32[5,3], index: 1, kind: input, shape index: {}]   ;;  %s154_s0 = inlined_call_operand.vmem [shape: f32[8,5], index: 0, kind: input, shape index: {}]   ;;  %s155_s2 = inlined_call_operand.vmem [shape: f32[1,3], index: 2, kind: input, shape index: {}]   ;;  %s156_s3 = inlined_call_operand.vmem [shape: f32[8,3], index: 3, kind: output, shape index: {}]  }
   0x1   :  { %112 = vmatprep.subr.mxu0 %v119_v0  ;;  %v15_v1 = vld [vmem:[%s153_s1] sm:$0x1f]  ;;  %114 = vmatprep.mubr.msk.f32.mxu0 %vm120_vm2, %v119_v0  ;;  %vm101_vm3 = vcmask 23552  }
   0x2   :  { %v14_v2 = vld [vmem:[%s154_s0] sm:$0xff]  ;;  %113 = vmatpush3.msk.msra.mxu0 %vm27_vm0, %v15_v1 }
   0x3   :  { %115 = vmatmul.mubr.msk.f32.vlgmr.msra.gmra.mxu0 %vm23_vm1, %v14_v2  ;;  %v107_v3 = vld [vmem:[%s155_s2] ss:$0 sm:$0xff] }
  0xc3   :  { %v97_v4 = vpop.f32.mrf.mxu0 }
  0xc4   :  { %v98_v5 = vadd.f32 %v107_v3, %v97_v4 }
  0xc5   :  { %v116_v6 = vpop.f32.mrf.mxu0 }
  0xc6   :  { %102 = vst.msk [vmem:[%s156_s3] sm:$0xff] %vm101_vm3, %v98_v5 }

</bundles_post_ra>
